<compile_context>
chip_gen: v7x
topology: tpu7x:2x2x1
jax: 0.10.0
libtpu: 0.0.40
codegen_flags: <defaults>
</compile_context>

<pallas_src>
import functools

import jax
import jax.numpy as jnp
import numpy as np
from jax.experimental import pallas as pl
from jax.experimental.pallas import tpu as pltpu


# ----------------------------------------------------------------------------
# Init-time parameter setup (plain JAX) -- mirrors make_K_3D_custom.
# ----------------------------------------------------------------------------
def make_K_3D_custom_jax(gamma, gamma_kp, alpha, R, matched_points, dims):
    """Returns Knorm of shape (V, V): Knorm[a, b], rows (a) sum to 1 over b."""
    numr, numc, numd = dims
    rA = jnp.arange(numr, dtype=jnp.float32)
    rB = jnp.arange(numc, dtype=jnp.float32)
    rC = jnp.arange(numd, dtype=jnp.float32)

    def point_dists(pts):  # pts: (num_mps, 3)
        rd = (pts[:, 0][:, None] - rA[None, :]) ** 2
        cd = (pts[:, 1][:, None] - rB[None, :]) ** 2
        dd = (pts[:, 2][:, None] - rC[None, :]) ** 2
        return jnp.sqrt(
            rd[:, :, None, None] + cd[:, None, :, None] + dd[:, None, None, :]
        )

    dA = jnp.minimum(point_dists(matched_points[:, 0, :]), R)
    dB = jnp.minimum(point_dists(matched_points[:, 1, :]), R)

    dA_e = dA[:, :, :, :, None, None, None]
    dB_e = dB[:, None, None, None, :, :, :]
    C_kp = jnp.mean((dA_e - dB_e) ** 2, axis=0)  # (r, c, d, r, c, d)

    # (Original torch code indexes ddiffs with numc; dims are cubic here so
    #  it is equivalent.)
    rdiffs = (rA[:, None] - rA[None, :]) ** 2
    cdiffs = (rB[:, None] - rB[None, :]) ** 2
    ddiffs = (rC[:, None] - rC[None, :]) ** 2
    C = (
        rdiffs[:, None, None, :, None, None]
        + cdiffs[None, :, None, None, :, None]
        + ddiffs[None, None, :, None, None, :]
    )

    total_cost = (1.0 - alpha) * C / (2.0 * gamma ** 2) + alpha * C_kp / (
        2.0 * gamma_kp ** 2
    )

    V = numr * numc * numd
    total_cost = total_cost.reshape(V, V)
    # f32 stability guard: subtract per-source-row min before exp.  The
    # per-row factor cancels exactly in the normalization below, so the
    # normalized kernel equals the torch f64 computation (up to f32 rounding).
    total_cost = total_cost - jnp.min(total_cost, axis=-1, keepdims=True)
    K = jnp.exp(-total_cost)
    K = K / jnp.sum(K, axis=-1, keepdims=True)
    return K  # (V, V), rows sum to 1


# ----------------------------------------------------------------------------
# Pallas kernels:  out_flat = x_flat @ K_mat   with K_mat = Knorm.T
# ----------------------------------------------------------------------------
def _single_block_kernel(x_ref, k_ref, o_ref):
    # Whole problem in one VMEM-resident block: one MXU matmul, no grid.
    o_ref[...] = jnp.dot(
        x_ref[...], k_ref[...], preferred_element_type=jnp.float32
    ).astype(o_ref.dtype)


def _tiled_kernel(x_ref, k_ref, o_ref, *, tk):
    # grid = (j: output-column tiles [parallel], k: contraction tiles [arbitrary])
    # x_ref is the full (N, V) array (constant block index -> fetched once).
    # Accumulate directly into the f32 output block (resident across k).
    k_step = pl.program_id(1)

    @pl.when(k_step == 0)
    def _():
        o_ref[...] = jnp.zeros_like(o_ref)

    start = pl.multiple_of(k_step * tk, tk)
    o_ref[...] += jnp.dot(
        x_ref[:, pl.ds(start, tk)], k_ref[...],
        preferred_element_type=jnp.float32,
    ).astype(o_ref.dtype)


# Whole (V, V) K fits comfortably as a single VMEM block up to ~16 MiB on all
# generations (v5e/v6e 128 MiB physical, v7x 64 MiB).
_SINGLE_BLOCK_MAX_K_BYTES = 16 << 20


@functools.partial(jax.jit, static_argnames=("tn", "tk", "force_tiled"))
def custom_keypoint_forward(x, K_mat, *, tn=512, tk=512, force_tiled=False):
    """x: (N, 1, H, W, Z) float32;  K_mat = Knorm.T, shape (V, V), V = H*W*Z."""
    N, C, H, W, Z = x.shape
    assert C == 1
    V = H * W * Z
    assert K_mat.shape == (V, V)

    x_flat = x.reshape(N, V)
    itemsize = K_mat.dtype.itemsize
    k_bytes = V * V * itemsize
    cost = pl.CostEstimate(
        flops=2 * N * V * V,
        transcendentals=0,
        bytes_accessed=k_bytes + 2 * N * V * x.dtype.itemsize,
    )

    if (not force_tiled) and k_bytes <= _SINGLE_BLOCK_MAX_K_BYTES:
        # --- single-block path (the shipped V=512 case) ---
        out_flat = pl.pallas_call(
            _single_block_kernel,
            out_shape=jax.ShapeDtypeStruct((N, V), x.dtype),
            cost_estimate=cost,
        )(x_flat, K_mat)
    else:
        # --- tiled path for large V ---
        tn = min(tn, V)
        tk = min(tk, V)
        assert V % tn == 0 and V % tk == 0
        assert tn % 128 == 0 and tk % 128 == 0
        # Double-buffered K tile + resident x + double-buffered out + margin.
        needed = 2 * tk * tn * itemsize + N * V * 4 + 2 * N * tn * 4 + (2 << 20)
        vmem_limit = needed if needed > (32 << 20) else None

        out_flat = pl.pallas_call(
            functools.partial(_tiled_kernel, tk=tk),
            out_shape=jax.ShapeDtypeStruct((N, V), x.dtype),
            grid_spec=pltpu.PrefetchScalarGridSpec(
                num_scalar_prefetch=0,
                grid=(V // tn, V // tk),  # reduction axis last
                in_specs=[
                    # x fully resident: constant block index -> single DMA
                    pl.BlockSpec((N, V), lambda j, k: (0, 0)),
                    # lane-dense K^T tile, long contiguous rows
                    pl.BlockSpec((tk, tn), lambda j, k: (k, j)),
                ],
                out_specs=pl.BlockSpec((N, tn), lambda j, k: (0, j)),
            ),
            compiler_params=pltpu.CompilerParams(
                dimension_semantics=("parallel", "arbitrary"),
                vmem_limit_bytes=vmem_limit,
            ),
            cost_estimate=cost,
        )(x_flat, K_mat)

    return out_flat.reshape(N, C, H, W, Z)


# ----------------------------------------------------------------------------
if __name__ == "__main__":
    # Small shapes consistent with the module: dims=[8,8,8] -> V = 512, N = 2.
    dims = [8, 8, 8]
    N = 2
    gamma, gamma_kp, alpha, R = 1.0, 1.0, 0.5, 5.0

    key = jax.random.PRNGKey(0)
    kp_key, x_key = jax.random.split(key)

    # Deterministic synthetic matched keypoints: (num_mps, 2, 3) in [0, 8).
    matched_points = jax.random.uniform(
        kp_key, (4, 2, 3), dtype=jnp.float32, minval=0.0, maxval=float(dims[0])
    )

    # Init-time parameter setup (plain JAX). The torch module's permute
    # gymnastics reduce to: hot path needs Knorm.T so that out = x @ Knorm.T.
    K_norm = make_K_3D_custom_jax(gamma, gamma_kp, alpha, R, matched_points, dims)
    K_mat = jnp.transpose(K_norm)  # (V, V), materialized once at init

    # Input: (N, C=1, H, W, Z)
    x = jax.random.normal(x_key, (N, 1, dims[0], dims[1], dims[2]), dtype=jnp.float32)

    V = dims[0] * dims[1] * dims[2]
    x_flat = x.reshape(N, V)
    # Reference mirrors the torch forward exactly: out[n, i] = sum_j K[i, j] x[n, j]
    ref = jnp.einsum("ij,nj->ni", K_norm, x_flat).reshape(x.shape)

    # Primary (single-block) path.
    out = custom_keypoint_forward(x, K_mat)
    out = jax.block_until_ready(out)
    np.testing.assert_allclose(np.asarray(out), np.asarray(ref), rtol=1e-5, atol=1e-5)

    # Exercise the tiled path too (small tiles just to hit the k-loop here;
    # for real large-V runs keep tn/tk >= 512 as defaulted).
    out_tiled = custom_keypoint_forward(x, K_mat, tn=256, tk=256, force_tiled=True)
    out_tiled = jax.block_until_ready(out_tiled)
    np.testing.assert_allclose(
        np.asarray(out_tiled), np.asarray(ref), rtol=1e-5, atol=1e-5
    )

    # TODO(synk): torch builds K in float64; TPU has no f64, so K is built in
    # f32 with a row-min-shifted exp (mathematically equivalent after row
    # normalization).
    print("KERNEL_OK")
</pallas_src>

<mosaic_0001>
module attributes {stable_mosaic.version = 11 : i64} {
  func.func @_single_block_kernel(%arg0: memref<2x512xf32, #tpu.memory_space<vmem>>, %arg1: memref<512x512xf32, #tpu.memory_space<vmem>>, %arg2: memref<2x512xf32, #tpu.memory_space<vmem>>) attributes {dimension_semantics = [], scalar_prefetch = 0 : i64, scratch_operands = 0 : i64, tpu.core_type = #tpu.core_type<tc>} {
    %c0 = arith.constant 0 : index
    %c0_0 = arith.constant 0 : index
    %0 = vector.load %arg0[%c0, %c0_0] : memref<2x512xf32, #tpu.memory_space<vmem>>, vector<2x512xf32>
    %c0_1 = arith.constant 0 : index
    %c0_2 = arith.constant 0 : index
    %1 = vector.load %arg1[%c0_1, %c0_2] : memref<512x512xf32, #tpu.memory_space<vmem>>, vector<512x512xf32>
    %cst = arith.constant dense<0.000000e+00> : vector<2x512xf32>
    %2 = tpu.matmul %0, %1, %cst {dimension_numbers = #tpu.dot_dimension_numbers<[1], [0], [0], [1], [0, 0, 1, 1], [], []>} : vector<2x512xf32>, vector<512x512xf32>, vector<2x512xf32> -> vector<2x512xf32>
    %c0_3 = arith.constant 0 : index
    %c0_4 = arith.constant 0 : index
    %3 = vector.load %arg2[%c0_3, %c0_4] : memref<2x512xf32, #tpu.memory_space<vmem>>, vector<2x512xf32>
    tpu.vector_store %arg2[%c0_3, %c0_4], %2 {strides = array<i32>} : memref<2x512xf32, #tpu.memory_space<vmem>>, vector<2x512xf32>,
    return
  }
}

</mosaic_0001>

<bundles_post_ra>
// kernel: custom_keypoint_forward.1
= control target key start
LH: loop header
LB: loop body
LE: loop exit
PB: predicated region body
PF: predicated region fallthrough
CT: control target
= control target key end

     0   :  { %7 = vsyncpa [#allocation3], 0  ;;  %s905_s9 = smov [#allocation2]   ;;  %s965_s0 = inlined_call_operand.vmem [shape: f32[2,512], index: 0, kind: input, shape index: {}]   ;;  %s966_s1 = inlined_call_operand.hbm [shape: f32[512,512], index: 1, kind: input, shape index: {}]   ;;  %s967_s2 = inlined_call_operand.vmem [shape: f32[2,512], index: 2, kind: output, shape index: {}]  }
   0x1   :  { %s15_s10 = sshll.u32 %s905_s9, 4  ;;  %s881_s13 = scalar_lea.hbm %s966_s1, 32768  ;;  %s16_s10 = int_to_ptr.vmem [resolvable:$true] %s15_s10 }
   0x2   :  { %p882_p0 = scmp.ne.s32.totalorder %s966_s1, %s881_s13  ;;  %p885_p1 = scmp.lt.u32.totalorder %s881_s13, %s966_s1 }
   0x4   :  { %p887_p2 = pnand %p885_p1, %p882_p0 }
   0x6   :  { %890 = shalt.err (!%p887_p2)
}
   0x7   :  { %s891_s18 = scalar_lea.vmem %s16_s10, 32768  ;;  %p896_p4 = scmp.lt.s32.totalorder %s16_s10, %s16_s10 }
   0x8   :  { %p892_p3 = scmp.ne.s32.totalorder %s16_s10, %s891_s18  ;;  %p897_p5 = scmp.lt.s32.totalorder %s891_s18, %s891_s18 }
   0xa   :  { %p898_p6 = por %p897_p5, %p896_p4 }
   0xc   :  { %p899_p7 = pnand %p898_p6, %p892_p3 }
   0xe   :  { %902 = shalt.err (!%p899_p7)
}
   0xf   :  { %s906_s19 = smov 512   ;;  %s907_s20 = smov 32  }
  0x10   :  { %21 = dma.hbm_to_vmem [thread:$0]  %s966_s1, 32768, %s16_s10, [#allocation3], %s906_s19, %s906_s19, %s907_s20  }
  0x11   :  { %903 = dma.done.wait [#allocation3], 32768  }
  0x12   :  { %904 = vsyncadd [#allocation3], 4294934528  ;;  %v27_v0 = vld [vmem:[#allocation2 + $0x8] sm:$0xff]  ;;  %v29_v2 = vld [vmem:[#allocation2 + $0x18] sm:$0xff] }
  0x13   :  { %v31_v1 = vld [vmem:[#allocation2 + $0x28] sm:$0xff]  ;;  %v33_v4 = vld [vmem:[#allocation2 + $0x38] sm:$0xff]  ;;  %v26_v5 = vld [vmem:[#allocation2] sm:$0xff] }
  0x14   :  { %v616_v3 = vpack.c.bf16 %v31_v1, %v27_v0  ;;  %v30_v6 = vld [vmem:[#allocation2 + $0x20] sm:$0xff]  ;;  %v744_v7 = vpack.c.bf16 %v33_v4, %v29_v2  ;;  %v28_v9 = vld [vmem:[#allocation2 + $0x10] sm:$0xff]  ;;  %v35_v11 = vld [vmem:[#allocation2 + $0x48] sm:$0xff] }
  0x15   :  { %v618_v8 = vpack.c.bf16 %v30_v6, %v26_v5  ;;  %v32_v10 = vld [vmem:[#allocation2 + $0x30] sm:$0xff]  ;;  %v39_v13 = vld [vmem:[#allocation2 + $0x68] sm:$0xff]  ;;  %v37_v14 = vld [vmem:[#allocation2 + $0x58] sm:$0xff] }
  0x16   :  { %617 = vmatprep.subr.bf16.mxu0 %v616_v3  ;;  %v746_v12 = vpack.c.bf16 %v32_v10, %v28_v9  ;;  %v41_v15 = vld [vmem:[#allocation2 + $0x78] sm:$0xff]  ;;  %745 = vmatprep.subr.bf16.mxu1 %v744_v7  ;;  %v620_v16 = vpack.c.bf16 %v39_v13, %v35_v11  ;;  %v34_v18 = vld [vmem:[#allocation2 + $0x40] sm:$0xff]  ;;  %v36_v20 = vld [vmem:[#allocation2 + $0x50] sm:$0xff] }
  0x17   :  { %619 = vmatpush1.bf16.msra.mxu0 %v618_v8  ;;  %v748_v17 = vpack.c.bf16 %v41_v15, %v37_v14  ;;  %v38_v19 = vld [vmem:[#allocation2 + $0x60] sm:$0xff]  ;;  %v40_v22 = vld [vmem:[#allocation2 + $0x70] sm:$0xff]  ;;  %v43_v23 = vld [vmem:[#allocation2 + $0x88] sm:$0xff] }
  0x18   :  { %747 = vmatpush1.bf16.msra.mxu1 %v746_v12  ;;  %v622_v21 = vpack.c.bf16 %v38_v19, %v34_v18  ;;  %v47_v24 = vld [vmem:[#allocation2 + $0xa8] sm:$0xff]  ;;  %621 = vmatprep.subr.bf16.mxu0 %v620_v16  ;;  %v750_v25 = vpack.c.bf16 %v40_v22, %v36_v20  ;;  %v45_v27 = vld [vmem:[#allocation2 + $0x98] sm:$0xff]  ;;  %v42_v29 = vld [vmem:[#allocation2 + $0x80] sm:$0xff] }
  0x19   :  { %749 = vmatprep.subr.bf16.mxu1 %v748_v17  ;;  %v624_v26 = vpack.c.bf16 %v47_v24, %v43_v23  ;;  %v49_v28 = vld [vmem:[#allocation2 + $0xb8] sm:$0xff]  ;;  %v46_v31 = vld [vmem:[#allocation2 + $0xa0] sm:$0xff]  ;;  %v44_v32 = vld [vmem:[#allocation2 + $0x90] sm:$0xff] }
  0x1a   :  { %v752_v30 = vpack.c.bf16 %v49_v28, %v45_v27  ;;  %v48_v33 = vld [vmem:[#allocation2 + $0xb0] sm:$0xff]  ;;  %v626_v34 = vpack.c.bf16 %v46_v31, %v42_v29  ;;  %v51_v35 = vld [vmem:[#allocation2 + $0xc8] sm:$0xff]  ;;  %v53_v37 = vld [vmem:[#allocation2 + $0xd8] sm:$0xff] }
  0x1b   :  { %623 = vmatpush1.bf16.msra.mxu0 %v622_v21  ;;  %v55_v36 = vld [vmem:[#allocation2 + $0xe8] sm:$0xff]  ;;  %v754_v38 = vpack.c.bf16 %v48_v33, %v44_v32  ;;  %v57_v40 = vld [vmem:[#allocation2 + $0xf8] sm:$0xff]  ;;  %v50_v41 = vld [vmem:[#allocation2 + $0xc0] sm:$0xff] }
  0x1c   :  { %751 = vmatpush1.bf16.msra.mxu1 %v750_v25  ;;  %625 = vmatprep.subr.bf16.mxu0 %v624_v26  ;;  %v628_v39 = vpack.c.bf16 %v55_v36, %v51_v35  ;;  %v54_v42 = vld [vmem:[#allocation2 + $0xe0] sm:$0xff]  ;;  %v756_v43 = vpack.c.bf16 %v57_v40, %v53_v37  ;;  %v52_v44 = vld [vmem:[#allocation2 + $0xd0] sm:$0xff]  ;;  %v59_v46 = vld [vmem:[#allocation2 + $0x108] sm:$0xff] }
  0x1d   :  { %753 = vmatprep.subr.bf16.mxu1 %v752_v30  ;;  %v56_v45 = vld [vmem:[#allocation2 + $0xf0] sm:$0xff]  ;;  %v63_v47 = vld [vmem:[#allocation2 + $0x128] sm:$0xff]  ;;  %v61_v48 = vld [vmem:[#allocation2 + $0x118] sm:$0xff]  ;;  %v630_v50 = vpack.c.bf16 %v54_v42, %v50_v41 }
  0x1e   :  { %v65_v49 = vld [vmem:[#allocation2 + $0x138] sm:$0xff]  ;;  %v758_v51 = vpack.c.bf16 %v56_v45, %v52_v44  ;;  %v632_v52 = vpack.c.bf16 %v63_v47, %v59_v46  ;;  %v58_v53 = vld [vmem:[#allocation2 + $0x100] sm:$0xff]  ;;  %v60_v55 = vld [vmem:[#allocation2 + $0x110] sm:$0xff]  ;;  %v908_v46 = vmov 1983009808  }
  0x1f   :  { %627 = vmatpush1.bf16.msra.mxu0 %v626_v34  ;;  %v62_v54 = vld [vmem:[#allocation2 + $0x120] sm:$0xff]  ;;  %v760_v56 = vpack.c.bf16 %v65_v49, %v61_v48  ;;  %v64_v57 = vld [vmem:[#allocation2 + $0x130] sm:$0xff]  ;;  %v67_v58 = vld [vmem:[#allocation2 + $0x148] sm:$0xff]  ;;  %v285_v47 = vunpack.c.l.s4 %v908_v46  ;;  %v287_v48 = vlaneseq }
  0x20   :  { %755 = vmatpush1.bf16.msra.mxu1 %v754_v38  ;;  %629 = vmatprep.subr.bf16.mxu0 %v628_v39  ;;  %v71_v59 = vld [vmem:[#allocation2 + $0x168] sm:$0xff]  ;;  %v69_v60 = vld [vmem:[#allocation2 + $0x158] sm:$0xff]  ;;  %v634_v62 = vpack.c.bf16 %v62_v54, %v58_v53  ;;  %v762_v63 = vpack.c.bf16 %v64_v57, %v60_v55  ;;  %v66_v1 = vld [vmem:[#allocation2 + $0x140] sm:$0xff] }
  0x21   :  { %757 = vmatprep.subr.bf16.mxu1 %v756_v43  ;;  %v73_v61 = vld [vmem:[#allocation2 + $0x178] sm:$0xff]  ;;  %v636_v0 = vpack.c.bf16 %v71_v59, %v67_v58  ;;  %v70_v2 = vld [vmem:[#allocation2 + $0x160] sm:$0xff]  ;;  %v68_v3 = vld [vmem:[#allocation2 + $0x150] sm:$0xff] }
  0x22   :  { %v764_v4 = vpack.c.bf16 %v73_v61, %v69_v60  ;;  %v72_v5 = vld [vmem:[#allocation2 + $0x170] sm:$0xff]  ;;  %v75_v6 = vld [vmem:[#allocation2 + $0x188] sm:$0xff]  ;;  %v77_v8 = vld [vmem:[#allocation2 + $0x198] sm:$0xff]  ;;  %v638_v10 = vpack.c.bf16 %v70_v2, %v66_v1  ;;  %v286_v61 = vunpack.c.0.s8 %v285_v47 }
  0x23   :  { %631 = vmatpush1.bf16.msra.mxu0 %v630_v50  ;;  %v79_v7 = vld [vmem:[#allocation2 + $0x1a8] sm:$0xff]  ;;  %v81_v9 = vld [vmem:[#allocation2 + $0x1b8] sm:$0xff]  ;;  %v766_v11 = vpack.c.bf16 %v72_v5, %v68_v3  ;;  %v74_v13 = vld [vmem:[#allocation2 + $0x180] sm:$0xff] }
  0x24   :  { %759 = vmatpush1.bf16.msra.mxu1 %v758_v51  ;;  %633 = vmatprep.subr.bf16.mxu0 %v632_v52  ;;  %v640_v12 = vpack.c.bf16 %v79_v7, %v75_v6  ;;  %v78_v14 = vld [vmem:[#allocation2 + $0x1a0] sm:$0xff]  ;;  %v76_v15 = vld [vmem:[#allocation2 + $0x190] sm:$0xff]  ;;  %v768_v16 = vpack.c.bf16 %v81_v9, %v77_v8  ;;  %v83_v18 = vld [vmem:[#allocation2 + $0x1c8] sm:$0xff] }
  0x25   :  { %761 = vmatprep.subr.bf16.mxu1 %v760_v56  ;;  %v80_v17 = vld [vmem:[#allocation2 + $0x1b0] sm:$0xff]  ;;  %v87_v19 = vld [vmem:[#allocation2 + $0x1e8] sm:$0xff]  ;;  %v85_v20 = vld [vmem:[#allocation2 + $0x1d8] sm:$0xff]  ;;  %v642_v22 = vpack.c.bf16 %v78_v14, %v74_v13 }
  0x26   :  { %v89_v21 = vld [vmem:[#allocation2 + $0x1f8] sm:$0xff]  ;;  %v770_v23 = vpack.c.bf16 %v80_v17, %v76_v15  ;;  %v644_v24 = vpack.c.bf16 %v87_v19, %v83_v18  ;;  %v82_v25 = vld [vmem:[#allocation2 + $0x1c0] sm:$0xff]  ;;  %v84_v27 = vld [vmem:[#allocation2 + $0x1d0] sm:$0xff] }
  0x27   :  { %635 = vmatpush1.bf16.msra.mxu0 %v634_v62  ;;  %v86_v26 = vld [vmem:[#allocation2 + $0x1e0] sm:$0xff]  ;;  %v772_v28 = vpack.c.bf16 %v89_v21, %v85_v20  ;;  %v88_v29 = vld [vmem:[#allocation2 + $0x1f0] sm:$0xff]  ;;  %v91_v30 = vld [vmem:[#allocation2 + $0x208] sm:$0xff]  ;;  %v288_v62 = vshrl.u32 %v287_v48, 7 }
  0x28   :  { %763 = vmatpush1.bf16.msra.mxu1 %v762_v63  ;;  %637 = vmatprep.subr.bf16.mxu0 %v636_v0  ;;  %v95_v31 = vld [vmem:[#allocation2 + $0x228] sm:$0xff]  ;;  %v93_v32 = vld [vmem:[#allocation2 + $0x218] sm:$0xff]  ;;  %v646_v34 = vpack.c.bf16 %v86_v26, %v82_v25  ;;  %v774_v35 = vpack.c.bf16 %v88_v29, %v84_v27  ;;  %v90_v37 = vld [vmem:[#allocation2 + $0x200] sm:$0xff] }
  0x29   :  { %765 = vmatprep.subr.bf16.mxu1 %v764_v4  ;;  %v97_v33 = vld [vmem:[#allocation2 + $0x238] sm:$0xff]  ;;  %v648_v36 = vpack.c.bf16 %v95_v31, %v91_v30  ;;  %v94_v38 = vld [vmem:[#allocation2 + $0x220] sm:$0xff]  ;;  %v92_v39 = vld [vmem:[#allocation2 + $0x210] sm:$0xff] }
  0x2a   :  { %v776_v40 = vpack.c.bf16 %v97_v33, %v93_v32  ;;  %v96_v41 = vld [vmem:[#allocation2 + $0x230] sm:$0xff]  ;;  %v99_v42 = vld [vmem:[#allocation2 + $0x248] sm:$0xff]  ;;  %v101_v44 = vld [vmem:[#allocation2 + $0x258] sm:$0xff]  ;;  %v650_v49 = vpack.c.bf16 %v94_v38, %v90_v37 }
  0x2b   :  { %639 = vmatpush1.bf16.msra.mxu0 %v638_v10  ;;  %v103_v43 = vld [vmem:[#allocation2 + $0x268] sm:$0xff]  ;;  %v105_v45 = vld [vmem:[#allocation2 + $0x278] sm:$0xff]  ;;  %v778_v50 = vpack.c.bf16 %v96_v41, %v92_v39  ;;  %v98_v52 = vld [vmem:[#allocation2 + $0x240] sm:$0xff] }
  0x2c   :  { %767 = vmatpush1.bf16.msra.mxu1 %v766_v11  ;;  %641 = vmatprep.subr.bf16.mxu0 %v640_v12  ;;  %v652_v51 = vpack.c.bf16 %v103_v43, %v99_v42  ;;  %v102_v53 = vld [vmem:[#allocation2 + $0x260] sm:$0xff]  ;;  %v100_v54 = vld [vmem:[#allocation2 + $0x250] sm:$0xff]  ;;  %v780_v55 = vpack.c.bf16 %v105_v45, %v101_v44  ;;  %v107_v57 = vld [vmem:[#allocation2 + $0x288] sm:$0xff]  ;;  %v936_v11 = vsub.s32 %v286_v61, %v288_v62 }
  0x2d   :  { %769 = vmatprep.subr.bf16.mxu1 %v768_v16  ;;  %v104_v56 = vld [vmem:[#allocation2 + $0x270] sm:$0xff]  ;;  %v111_v58 = vld [vmem:[#allocation2 + $0x2a8] sm:$0xff]  ;;  %v109_v59 = vld [vmem:[#allocation2 + $0x298] sm:$0xff]  ;;  %v654_v63 = vpack.c.bf16 %v102_v53, %v98_v52 }
  0x2e   :  { %v113_v60 = vld [vmem:[#allocation2 + $0x2b8] sm:$0xff]  ;;  %v782_v0 = vpack.c.bf16 %v104_v56, %v100_v54  ;;  %v656_v1 = vpack.c.bf16 %v111_v58, %v107_v57  ;;  %v106_v2 = vld [vmem:[#allocation2 + $0x280] sm:$0xff]  ;;  %v108_v4 = vld [vmem:[#allocation2 + $0x290] sm:$0xff] }
  0x2f   :  { %643 = vmatpush1.bf16.msra.mxu0 %v642_v22  ;;  %v110_v3 = vld [vmem:[#allocation2 + $0x2a0] sm:$0xff]  ;;  %v784_v5 = vpack.c.bf16 %v113_v60, %v109_v59  ;;  %v112_v6 = vld [vmem:[#allocation2 + $0x2b0] sm:$0xff]  ;;  %v115_v7 = vld [vmem:[#allocation2 + $0x2c8] sm:$0xff] }
  0x30   :  { %771 = vmatpush1.bf16.msra.mxu1 %v770_v23  ;;  %645 = vmatprep.subr.bf16.mxu0 %v644_v24  ;;  %v119_v8 = vld [vmem:[#allocation2 + $0x2e8] sm:$0xff]  ;;  %v117_v9 = vld [vmem:[#allocation2 + $0x2d8] sm:$0xff]  ;;  %v658_v12 = vpack.c.bf16 %v110_v3, %v106_v2  ;;  %v114_v13 = vld [vmem:[#allocation2 + $0x2c0] sm:$0xff]  ;;  %v786_v14 = vpack.c.bf16 %v112_v6, %v108_v4 }
  0x31   :  { %773 = vmatprep.subr.bf16.mxu1 %v772_v28  ;;  %v121_v10 = vld [vmem:[#allocation2 + $0x2f8] sm:$0xff]  ;;  %v660_v15 = vpack.c.bf16 %v119_v8, %v115_v7  ;;  %v118_v16 = vld [vmem:[#allocation2 + $0x2e0] sm:$0xff]  ;;  %v116_v17 = vld [vmem:[#allocation2 + $0x2d0] sm:$0xff] }
  0x32   :  { %v120_v18 = vld [vmem:[#allocation2 + $0x2f0] sm:$0xff]  ;;  %v788_v19 = vpack.c.bf16 %v121_v10, %v117_v9  ;;  %v123_v20 = vld [vmem:[#allocation2 + $0x308] sm:$0xff]  ;;  %v941_v22 = vld [vmem:[%s965_s0] sm:$0xff]  ;;  %v662_v26 = vpack.c.bf16 %v118_v16, %v114_v13 }
  0x33   :  { %647 = vmatpush1.bf16.msra.mxu0 %v646_v34  ;;  %v127_v21 = vld [vmem:[#allocation2 + $0x328] sm:$0xff]  ;;  %v125_v23 = vld [vmem:[#allocation2 + $0x318] sm:$0xff]  ;;  %v945_v25 = vrot.slane %v941_v22, %v936_v11  ;;  %v790_v27 = vpack.c.bf16 %v120_v18, %v116_v17  ;;  %v122_v29 = vld [vmem:[#allocation2 + $0x300] sm:$0xff]  ;;  %v283_v7 = vcombine.high %v941_v22, %v941_v22 }
  0x34   :  { %775 = vmatpush1.bf16.msra.mxu1 %v774_v35  ;;  %649 = vmatprep.subr.bf16.mxu0 %v648_v36  ;;  %v129_v24 = vld [vmem:[#allocation2 + $0x338] sm:$0xff]  ;;  %v664_v28 = vpack.c.bf16 %v127_v21, %v123_v20  ;;  %v126_v30 = vld [vmem:[#allocation2 + $0x320] sm:$0xff]  ;;  %v124_v31 = vld [vmem:[#allocation2 + $0x310] sm:$0xff] }
  0x35   :  { %777 = vmatprep.subr.bf16.mxu1 %v776_v40  ;;  %v298_v32 = vcombine.high %v945_v25, %v945_v25  ;;  %v792_v33 = vpack.c.bf16 %v129_v24, %v125_v23  ;;  %v128_v34 = vld [vmem:[#allocation2 + $0x330] sm:$0xff]  ;;  %v131_v35 = vld [vmem:[#allocation2 + $0x348] sm:$0xff]  ;;  %v133_v37 = vld [vmem:[#allocation2 + $0x358] sm:$0xff]  ;;  %v666_v39 = vpack.c.bf16 %v126_v30, %v122_v29  ;;  %v952_v22 = vrot.slane %v283_v7, %v936_v11 }
  0x36   :  { %v135_v36 = vld [vmem:[#allocation2 + $0x368] sm:$0xff]  ;;  %v137_v38 = vld [vmem:[#allocation2 + $0x378] sm:$0xff]  ;;  %v794_v40 = vpack.c.bf16 %v128_v34, %v124_v31  ;;  %v130_v42 = vld [vmem:[#allocation2 + $0x340] sm:$0xff] }
  0x37   :  { %651 = vmatpush1.bf16.msra.mxu0 %v650_v49  ;;  %368 = vmatprep.mubr.f32.mxu0 %v298_v32  ;;  %v668_v41 = vpack.c.bf16 %v135_v36, %v131_v35  ;;  %v134_v43 = vld [vmem:[#allocation2 + $0x360] sm:$0xff]  ;;  %v132_v44 = vld [vmem:[#allocation2 + $0x350] sm:$0xff]  ;;  %v796_v45 = vpack.c.bf16 %v137_v38, %v133_v37  ;;  %v139_v47 = vld [vmem:[#allocation2 + $0x388] sm:$0xff]  ;;  %v299_v37 = vcombine.high %v952_v22, %v952_v22 }
  0x38   :  { %779 = vmatpush1.bf16.msra.mxu1 %v778_v50  ;;  %653 = vmatprep.subr.bf16.mxu0 %v652_v51  ;;  %v136_v46 = vld [vmem:[#allocation2 + $0x370] sm:$0xff]  ;;  %v143_v48 = vld [vmem:[#allocation2 + $0x3a8] sm:$0xff]  ;;  %v141_v49 = vld [vmem:[#allocation2 + $0x398] sm:$0xff]  ;;  %v670_v51 = vpack.c.bf16 %v134_v43, %v130_v42 }
  0x39   :  { %781 = vmatprep.subr.bf16.mxu1 %v780_v55  ;;  %510 = vmatprep.mubr.f32.mxu1 %v298_v32  ;;  %v145_v50 = vld [vmem:[#allocation2 + $0x3b8] sm:$0xff]  ;;  %v798_v52 = vpack.c.bf16 %v136_v46, %v132_v44  ;;  %v672_v53 = vpack.c.bf16 %v143_v48, %v139_v47  ;;  %v138_v54 = vld [vmem:[#allocation2 + $0x380] sm:$0xff]  ;;  %v140_v56 = vld [vmem:[#allocation2 + $0x390] sm:$0xff] }
  0x3a   :  { %v142_v55 = vld [vmem:[#allocation2 + $0x3a0] sm:$0xff]  ;;  %v800_v57 = vpack.c.bf16 %v145_v50, %v141_v49  ;;  %v144_v58 = vld [vmem:[#allocation2 + $0x3b0] sm:$0xff]  ;;  %v147_v59 = vld [vmem:[#allocation2 + $0x3c8] sm:$0xff] }
  0x3b   :  { %655 = vmatpush1.bf16.msra.mxu0 %v654_v63  ;;  %v151_v60 = vld [vmem:[#allocation2 + $0x3e8] sm:$0xff]  ;;  %v149_v61 = vld [vmem:[#allocation2 + $0x3d8] sm:$0xff]  ;;  %v674_v63 = vpack.c.bf16 %v142_v55, %v138_v54  ;;  %v146_v2 = vld [vmem:[#allocation2 + $0x3c0] sm:$0xff] }
  0x3c   :  { %783 = vmatpush1.bf16.msra.mxu1 %v782_v0  ;;  %657 = vmatprep.subr.bf16.mxu0 %v656_v1  ;;  %v153_v62 = vld [vmem:[#allocation2 + $0x3f8] sm:$0xff]  ;;  %v802_v0 = vpack.c.bf16 %v144_v58, %v140_v56  ;;  %v676_v1 = vpack.c.bf16 %v151_v60, %v147_v59  ;;  %v150_v3 = vld [vmem:[#allocation2 + $0x3e0] sm:$0xff]  ;;  %v148_v4 = vld [vmem:[#allocation2 + $0x3d0] sm:$0xff] }
  0x3d   :  { %785 = vmatprep.subr.bf16.mxu1 %v784_v5  ;;  %v804_v5 = vpack.c.bf16 %v153_v62, %v149_v61  ;;  %v152_v6 = vld [vmem:[#allocation2 + $0x3f0] sm:$0xff]  ;;  %v155_v8 = vld [vmem:[#allocation2 + $0x408] sm:$0xff]  ;;  %v157_v10 = vld [vmem:[#allocation2 + $0x418] sm:$0xff]  ;;  %v678_v13 = vpack.c.bf16 %v150_v3, %v146_v2 }
  0x3e   :  { %v159_v9 = vld [vmem:[#allocation2 + $0x428] sm:$0xff]  ;;  %v154_v16 = vld [vmem:[#allocation2 + $0x400] sm:$0xff]  ;;  %v156_v18 = vld [vmem:[#allocation2 + $0x410] sm:$0xff] }
  0x3f   :  { %659 = vmatpush1.bf16.msra.mxu0 %v658_v12  ;;  %v161_v12 = vld [vmem:[#allocation2 + $0x438] sm:$0xff]  ;;  %v158_v17 = vld [vmem:[#allocation2 + $0x420] sm:$0xff]  ;;  %v160_v20 = vld [vmem:[#allocation2 + $0x430] sm:$0xff] }
  0x40   :  { %787 = vmatpush1.bf16.msra.mxu1 %v786_v14  ;;  %661 = vmatprep.subr.bf16.mxu0 %v660_v15  ;;  %v806_v14 = vpack.c.bf16 %v152_v6, %v148_v4  ;;  %v680_v15 = vpack.c.bf16 %v159_v9, %v155_v8  ;;  %v163_v21 = vld [vmem:[#allocation2 + $0x448] sm:$0xff]  ;;  %v165_v24 = vld [vmem:[#allocation2 + $0x458] sm:$0xff]  ;;  %v162_v30 = vld [vmem:[#allocation2 + $0x440] sm:$0xff] }
  0x41   :  { %789 = vmatprep.subr.bf16.mxu1 %v788_v19  ;;  %v808_v19 = vpack.c.bf16 %v161_v12, %v157_v10  ;;  %v167_v23 = vld [vmem:[#allocation2 + $0x468] sm:$0xff]  ;;  %v166_v31 = vld [vmem:[#allocation2 + $0x460] sm:$0xff]  ;;  %v164_v32 = vld [vmem:[#allocation2 + $0x450] sm:$0xff] }
  0x42   :  { %v684_v29 = vpack.c.bf16 %v167_v23, %v163_v21  ;;  %v168_v34 = vld [vmem:[#allocation2 + $0x470] sm:$0xff]  ;;  %v171_v35 = vld [vmem:[#allocation2 + $0x488] sm:$0xff]  ;;  %v173_v38 = vld [vmem:[#allocation2 + $0x498] sm:$0xff] }
  0x43   :  { %663 = vmatpush1.bf16.msra.mxu0 %v662_v26  ;;  %v169_v26 = vld [vmem:[#allocation2 + $0x478] sm:$0xff]  ;;  %v175_v36 = vld [vmem:[#allocation2 + $0x4a8] sm:$0xff]  ;;  %v170_v43 = vld [vmem:[#allocation2 + $0x480] sm:$0xff] }
  0x44   :  { %791 = vmatpush1.bf16.msra.mxu1 %v790_v27  ;;  %665 = vmatprep.subr.bf16.mxu0 %v664_v28  ;;  %v682_v27 = vpack.c.bf16 %v158_v17, %v154_v16  ;;  %v810_v28 = vpack.c.bf16 %v160_v20, %v156_v18  ;;  %v688_v42 = vpack.c.bf16 %v175_v36, %v171_v35  ;;  %v174_v44 = vld [vmem:[#allocation2 + $0x4a0] sm:$0xff]  ;;  %v176_v47 = vld [vmem:[#allocation2 + $0x4b0] sm:$0xff]  ;;  %v179_v48 = vld [vmem:[#allocation2 + $0x4c8] sm:$0xff] }
  0x45   :  { %793 = vmatprep.subr.bf16.mxu1 %v792_v33  ;;  %v812_v33 = vpack.c.bf16 %v169_v26, %v165_v24  ;;  %v183_v49 = vld [vmem:[#allocation2 + $0x4e8] sm:$0xff]  ;;  %v181_v50 = vld [vmem:[#allocation2 + $0x4d8] sm:$0xff]  ;;  %v178_v54 = vld [vmem:[#allocation2 + $0x4c0] sm:$0xff] }
  0x46   :  { %v182_v55 = vld [vmem:[#allocation2 + $0x4e0] sm:$0xff]  ;;  %v180_v56 = vld [vmem:[#allocation2 + $0x4d0] sm:$0xff]  ;;  %v187_v59 = vld [vmem:[#allocation2 + $0x508] sm:$0xff] }
  0x47   :  { %667 = vmatpush1.bf16.msra.mxu0 %v666_v39  ;;  %v177_v39 = vld [vmem:[#allocation2 + $0x4b8] sm:$0xff]  ;;  %v184_v58 = vld [vmem:[#allocation2 + $0x4f0] sm:$0xff]  ;;  %v191_v60 = vld [vmem:[#allocation2 + $0x528] sm:$0xff] }
  0x48   :  { %795 = vmatpush1.bf16.msra.mxu1 %v794_v40  ;;  %669 = vmatprep.subr.bf16.mxu0 %v668_v41  ;;  %v686_v40 = vpack.c.bf16 %v166_v31, %v162_v30  ;;  %v814_v41 = vpack.c.bf16 %v168_v34, %v164_v32  ;;  %v816_v46 = vpack.c.bf16 %v177_v39, %v173_v38  ;;  %v189_v61 = vld [vmem:[#allocation2 + $0x518] sm:$0xff]  ;;  %v186_v2 = vld [vmem:[#allocation2 + $0x500] sm:$0xff]  ;;  %v188_v4 = vld [vmem:[#allocation2 + $0x510] sm:$0xff] }
  0x49   :  { %797 = vmatprep.subr.bf16.mxu1 %v796_v45  ;;  %v172_v45 = vld [vmem:[#allocation2 + $0x490] sm:$0xff]  ;;  %v193_v62 = vld [vmem:[#allocation2 + $0x538] sm:$0xff]  ;;  %v190_v3 = vld [vmem:[#allocation2 + $0x520] sm:$0xff] }
  0x4a   :  { %v192_v6 = vld [vmem:[#allocation2 + $0x530] sm:$0xff]  ;;  %v195_v7 = vld [vmem:[#allocation2 + $0x548] sm:$0xff]  ;;  %v197_v9 = vld [vmem:[#allocation2 + $0x558] sm:$0xff]  ;;  %v698_v12 = vpack.c.bf16 %v190_v3, %v186_v2 }
  0x4b   :  { %671 = vmatpush1.bf16.msra.mxu0 %v670_v51  ;;  %v185_v51 = vld [vmem:[#allocation2 + $0x4f8] sm:$0xff]  ;;  %v199_v8 = vld [vmem:[#allocation2 + $0x568] sm:$0xff]  ;;  %v198_v16 = vld [vmem:[#allocation2 + $0x560] sm:$0xff] }
  0x4c   :  { %799 = vmatpush1.bf16.msra.mxu1 %v798_v52  ;;  %673 = vmatprep.subr.bf16.mxu0 %v672_v53  ;;  %v690_v52 = vpack.c.bf16 %v174_v44, %v170_v43  ;;  %v692_v53 = vpack.c.bf16 %v183_v49, %v179_v48  ;;  %v201_v10 = vld [vmem:[#allocation2 + $0x578] sm:$0xff]  ;;  %v196_v17 = vld [vmem:[#allocation2 + $0x550] sm:$0xff]  ;;  %v203_v20 = vld [vmem:[#allocation2 + $0x588] sm:$0xff] }
  0x4d   :  { %801 = vmatprep.subr.bf16.mxu1 %v800_v57  ;;  %v820_v57 = vpack.c.bf16 %v185_v51, %v181_v50  ;;  %v828_v18 = vpack.c.bf16 %v201_v10, %v197_v9  ;;  %v207_v21 = vld [vmem:[#allocation2 + $0x5a8] sm:$0xff]  ;;  %v205_v23 = vld [vmem:[#allocation2 + $0x598] sm:$0xff]  ;;  %v206_v30 = vld [vmem:[#allocation2 + $0x5a0] sm:$0xff] }
  0x4e   :  { %v209_v24 = vld [vmem:[#allocation2 + $0x5b8] sm:$0xff]  ;;  %v204_v31 = vld [vmem:[#allocation2 + $0x590] sm:$0xff]  ;;  %v211_v34 = vld [vmem:[#allocation2 + $0x5c8] sm:$0xff] }
  0x4f   :  { %675 = vmatpush1.bf16.msra.mxu0 %v674_v63  ;;  %v694_v63 = vpack.c.bf16 %v182_v55, %v178_v54  ;;  %v832_v32 = vpack.c.bf16 %v209_v24, %v205_v23  ;;  %v215_v35 = vld [vmem:[#allocation2 + $0x5e8] sm:$0xff]  ;;  %v213_v36 = vld [vmem:[#allocation2 + $0x5d8] sm:$0xff]  ;;  %v212_v43 = vld [vmem:[#allocation2 + $0x5d0] sm:$0xff] }
  0x50   :  { %803 = vmatpush1.bf16.msra.mxu1 %v802_v0  ;;  %677 = vmatprep.subr.bf16.mxu0 %v676_v1  ;;  %v822_v0 = vpack.c.bf16 %v184_v58, %v180_v56  ;;  %v696_v1 = vpack.c.bf16 %v191_v60, %v187_v59  ;;  %v221_v48 = vld [vmem:[#allocation2 + $0x618] sm:$0xff]  ;;  %v220_v54 = vld [vmem:[#allocation2 + $0x610] sm:$0xff]  ;;  %v231_v58 = vld [vmem:[#allocation2 + $0x668] sm:$0xff] }
  0x51   :  { %805 = vmatprep.subr.bf16.mxu1 %v804_v5  ;;  %v824_v5 = vpack.c.bf16 %v193_v62, %v189_v61  ;;  %v225_v49 = vld [vmem:[#allocation2 + $0x638] sm:$0xff]  ;;  %v224_v56 = vld [vmem:[#allocation2 + $0x630] sm:$0xff] }
  0x52   :  { %v840_v55 = vpack.c.bf16 %v225_v49, %v221_v48  ;;  %v229_v59 = vld [vmem:[#allocation2 + $0x658] sm:$0xff]  ;;  %v842_v62 = vpack.c.bf16 %v224_v56, %v220_v54  ;;  %v228_v2 = vld [vmem:[#allocation2 + $0x650] sm:$0xff]  ;;  %v271_v56 = vld [vmem:[#allocation2 + $0x7a8] sm:$0xff] }
  0x53   :  { %679 = vmatpush1.bf16.msra.mxu0 %v678_v13  ;;  %v826_v13 = vpack.c.bf16 %v192_v6, %v188_v4  ;;  %v233_v60 = vld [vmem:[#allocation2 + $0x678] sm:$0xff]  ;;  %v232_v4 = vld [vmem:[#allocation2 + $0x670] sm:$0xff]  ;;  %v239_v6 = vld [vmem:[#allocation2 + $0x6a8] sm:$0xff] }
  0x54   :  { %807 = vmatpush1.bf16.msra.mxu1 %v806_v14  ;;  %681 = vmatprep.subr.bf16.mxu0 %v680_v15  ;;  %v700_v14 = vpack.c.bf16 %v199_v8, %v195_v7  ;;  %v194_v15 = vld [vmem:[#allocation2 + $0x540] sm:$0xff]  ;;  %v844_v3 = vpack.c.bf16 %v233_v60, %v229_v59  ;;  %v237_v7 = vld [vmem:[#allocation2 + $0x698] sm:$0xff]  ;;  %v846_v10 = vpack.c.bf16 %v232_v4, %v228_v2  ;;  %v264_v54 = vld [vmem:[#allocation2 + $0x770] sm:$0xff] }
  0x55   :  { %809 = vmatprep.subr.bf16.mxu1 %v808_v19  ;;  %v200_v19 = vld [vmem:[#allocation2 + $0x570] sm:$0xff]  ;;  %v702_v26 = vpack.c.bf16 %v198_v16, %v194_v15  ;;  %v241_v8 = vld [vmem:[#allocation2 + $0x6b8] sm:$0xff]  ;;  %v279_v4 = vld [vmem:[#allocation2 + $0x7e8] sm:$0xff] }
  0x56   :  { %369 = vmatmul.mubr.f32.vlgmr.msra.gmra.mrb[0].mxu0 %v945_v25  ;;  %v236_v15 = vld [vmem:[#allocation2 + $0x690] sm:$0xff]  ;;  %v848_v16 = vpack.c.bf16 %v241_v8, %v237_v7 }
  0x57   :  { %683 = vmatpush1.bf16.msra.mxu0 %v682_v27  ;;  %511 = vmatmul.mubr.f32.vlgmr.msra.gmra.mrb[0].mxu1 %v945_v25  ;;  %v818_v25 = vpack.c.bf16 %v176_v47, %v172_v45  ;;  %v830_v27 = vpack.c.bf16 %v200_v19, %v196_v17  ;;  %v216_v45 = vld [vmem:[#allocation2 + $0x5f0] sm:$0xff]  ;;  %v223_v47 = vld [vmem:[#allocation2 + $0x628] sm:$0xff] }
  0x58   :  { %811 = vmatpush1.bf16.msra.mxu1 %v810_v28  ;;  %685 = vmatprep.subr.bf16.mxu0 %v684_v29  ;;  %v704_v28 = vpack.c.bf16 %v207_v21, %v203_v20  ;;  %v202_v29 = vld [vmem:[#allocation2 + $0x580] sm:$0xff]  ;;  %v838_v51 = vpack.c.bf16 %v216_v45, %v212_v43  ;;  %v240_v17 = vld [vmem:[#allocation2 + $0x6b0] sm:$0xff]  ;;  %v247_v19 = vld [vmem:[#allocation2 + $0x6e8] sm:$0xff] }
  0x59   :  { %813 = vmatprep.subr.bf16.mxu1 %v812_v33  ;;  %439 = vmatprep.mubr.f32.mxu0 %v299_v37  ;;  %v208_v33 = vld [vmem:[#allocation2 + $0x5b0] sm:$0xff]  ;;  %v706_v38 = vpack.c.bf16 %v206_v30, %v202_v29  ;;  %v245_v20 = vld [vmem:[#allocation2 + $0x6d8] sm:$0xff]  ;;  %v850_v24 = vpack.c.bf16 %v240_v17, %v236_v15  ;;  %v263_v45 = vld [vmem:[#allocation2 + $0x768] sm:$0xff] }
  0x5a   :  { %581 = vmatprep.mubr.f32.mxu1 %v299_v37  ;;  %v217_v37 = vld [vmem:[#allocation2 + $0x5f8] sm:$0xff]  ;;  %v834_v39 = vpack.c.bf16 %v208_v33, %v204_v31  ;;  %v244_v29 = vld [vmem:[#allocation2 + $0x6d0] sm:$0xff]  ;;  %v255_v33 = vld [vmem:[#allocation2 + $0x728] sm:$0xff] }
  0x5b   :  { %687 = vmatpush1.bf16.msra.mxu0 %v686_v40  ;;  %v708_v40 = vpack.c.bf16 %v215_v35, %v211_v34  ;;  %v836_v44 = vpack.c.bf16 %v217_v37, %v213_v36  ;;  %v249_v21 = vld [vmem:[#allocation2 + $0x6f8] sm:$0xff]  ;;  %v248_v31 = vld [vmem:[#allocation2 + $0x6f0] sm:$0xff] }
  0x5c   :  { %815 = vmatpush1.bf16.msra.mxu1 %v814_v41  ;;  %689 = vmatprep.subr.bf16.mxu0 %v688_v42  ;;  %v210_v41 = vld [vmem:[#allocation2 + $0x5c0] sm:$0xff]  ;;  %v852_v30 = vpack.c.bf16 %v249_v21, %v245_v20  ;;  %v253_v34 = vld [vmem:[#allocation2 + $0x718] sm:$0xff]  ;;  %v854_v37 = vpack.c.bf16 %v248_v31, %v244_v29  ;;  %v256_v43 = vld [vmem:[#allocation2 + $0x730] sm:$0xff] }
  0x5d   :  { %817 = vmatprep.subr.bf16.mxu1 %v816_v46  ;;  %v214_v42 = vld [vmem:[#allocation2 + $0x5e0] sm:$0xff]  ;;  %v219_v46 = vld [vmem:[#allocation2 + $0x608] sm:$0xff]  ;;  %v257_v35 = vld [vmem:[#allocation2 + $0x738] sm:$0xff] }
  0x5e   :  { %v710_v50 = vpack.c.bf16 %v214_v42, %v210_v41  ;;  %v252_v41 = vld [vmem:[#allocation2 + $0x710] sm:$0xff]  ;;  %v856_v42 = vpack.c.bf16 %v257_v35, %v253_v34 }
  0x5f   :  { %691 = vmatpush1.bf16.msra.mxu0 %v690_v52  ;;  %v712_v52 = vpack.c.bf16 %v223_v47, %v219_v46  ;;  %v261_v46 = vld [vmem:[#allocation2 + $0x758] sm:$0xff]  ;;  %v858_v49 = vpack.c.bf16 %v256_v43, %v252_v41  ;;  %v272_v2 = vld [vmem:[#allocation2 + $0x7b0] sm:$0xff] }
  0x60   :  { %819 = vmatpush1.bf16.msra.mxu1 %v818_v25  ;;  %693 = vmatprep.subr.bf16.mxu0 %v692_v53  ;;  %v218_v25 = vld [vmem:[#allocation2 + $0x600] sm:$0xff]  ;;  %v265_v47 = vld [vmem:[#allocation2 + $0x778] sm:$0xff]  ;;  %v280_v15 = vld [vmem:[#allocation2 + $0x7f0] sm:$0xff] }
  0x61   :  { %821 = vmatprep.subr.bf16.mxu1 %v820_v57  ;;  %v222_v53 = vld [vmem:[#allocation2 + $0x620] sm:$0xff]  ;;  %v227_v57 = vld [vmem:[#allocation2 + $0x648] sm:$0xff] }
  0x62   :  { %v714_v61 = vpack.c.bf16 %v222_v53, %v218_v25  ;;  %v260_v25 = vld [vmem:[#allocation2 + $0x750] sm:$0xff]  ;;  %v860_v53 = vpack.c.bf16 %v265_v47, %v261_v46 }
  0x63   :  { %695 = vmatpush1.bf16.msra.mxu0 %v694_v63  ;;  %v716_v63 = vpack.c.bf16 %v231_v58, %v227_v57  ;;  %v269_v57 = vld [vmem:[#allocation2 + $0x798] sm:$0xff]  ;;  %v862_v60 = vpack.c.bf16 %v264_v54, %v260_v25 }
  0x64   :  { %823 = vmatpush1.bf16.msra.mxu1 %v822_v0  ;;  %697 = vmatprep.subr.bf16.mxu0 %v696_v1  ;;  %v226_v0 = vld [vmem:[#allocation2 + $0x640] sm:$0xff]  ;;  %v273_v58 = vld [vmem:[#allocation2 + $0x7b8] sm:$0xff] }
  0x65   :  { %825 = vmatprep.subr.bf16.mxu1 %v824_v5  ;;  %v230_v1 = vld [vmem:[#allocation2 + $0x660] sm:$0xff]  ;;  %v235_v5 = vld [vmem:[#allocation2 + $0x688] sm:$0xff] }
  0x66   :  { %v718_v9 = vpack.c.bf16 %v230_v1, %v226_v0  ;;  %v268_v0 = vld [vmem:[#allocation2 + $0x790] sm:$0xff]  ;;  %v864_v1 = vpack.c.bf16 %v273_v58, %v269_v57 }
  0x67   :  { %699 = vmatpush1.bf16.msra.mxu0 %v698_v12  ;;  %v720_v12 = vpack.c.bf16 %v239_v6, %v235_v5  ;;  %v277_v5 = vld [vmem:[#allocation2 + $0x7d8] sm:$0xff]  ;;  %v866_v8 = vpack.c.bf16 %v272_v2, %v268_v0 }
  0x68   :  { %827 = vmatpush1.bf16.msra.mxu1 %v826_v13  ;;  %701 = vmatprep.subr.bf16.mxu0 %v700_v14  ;;  %v234_v13 = vld [vmem:[#allocation2 + $0x680] sm:$0xff]  ;;  %v281_v6 = vld [vmem:[#allocation2 + $0x7f8] sm:$0xff] }
  0x69   :  { %829 = vmatprep.subr.bf16.mxu1 %v828_v18  ;;  %v238_v14 = vld [vmem:[#allocation2 + $0x6a0] sm:$0xff]  ;;  %v243_v18 = vld [vmem:[#allocation2 + $0x6c8] sm:$0xff] }
  0x6a   :  { %v722_v23 = vpack.c.bf16 %v238_v14, %v234_v13  ;;  %v868_v13 = vpack.c.bf16 %v281_v6, %v277_v5  ;;  %v276_v14 = vld [vmem:[#allocation2 + $0x7d0] sm:$0xff] }
  0x6b   :  { %703 = vmatpush1.bf16.msra.mxu0 %v702_v26  ;;  %v724_v26 = vpack.c.bf16 %v247_v19, %v243_v18  ;;  %v870_v17 = vpack.c.bf16 %v280_v15, %v276_v14 }
  0x6c   :  { %831 = vmatpush1.bf16.msra.mxu1 %v830_v27  ;;  %705 = vmatprep.subr.bf16.mxu0 %v704_v28  ;;  %v242_v27 = vld [vmem:[#allocation2 + $0x6c0] sm:$0xff] }
  0x6d   :  { %833 = vmatprep.subr.bf16.mxu1 %v832_v32  ;;  %v246_v28 = vld [vmem:[#allocation2 + $0x6e0] sm:$0xff]  ;;  %v251_v32 = vld [vmem:[#allocation2 + $0x708] sm:$0xff] }
  0x6e   :  { %v726_v36 = vpack.c.bf16 %v246_v28, %v242_v27 }
  0x6f   :  { %707 = vmatpush1.bf16.msra.mxu0 %v706_v38  ;;  %v728_v38 = vpack.c.bf16 %v255_v33, %v251_v32 }
  0x70   :  { %835 = vmatpush1.bf16.msra.mxu1 %v834_v39  ;;  %709 = vmatprep.subr.bf16.mxu0 %v708_v40  ;;  %v250_v39 = vld [vmem:[#allocation2 + $0x700] sm:$0xff] }
  0x71   :  { %837 = vmatprep.subr.bf16.mxu1 %v836_v44  ;;  %v254_v40 = vld [vmem:[#allocation2 + $0x720] sm:$0xff]  ;;  %v259_v44 = vld [vmem:[#allocation2 + $0x748] sm:$0xff] }
  0x72   :  { %v730_v48 = vpack.c.bf16 %v254_v40, %v250_v39 }
  0x73   :  { %711 = vmatpush1.bf16.msra.mxu0 %v710_v50  ;;  %v732_v50 = vpack.c.bf16 %v263_v45, %v259_v44 }
  0x74   :  { %839 = vmatpush1.bf16.msra.mxu1 %v838_v51  ;;  %713 = vmatprep.subr.bf16.mxu0 %v712_v52  ;;  %v258_v51 = vld [vmem:[#allocation2 + $0x740] sm:$0xff] }
  0x75   :  { %841 = vmatprep.subr.bf16.mxu1 %v840_v55  ;;  %v262_v52 = vld [vmem:[#allocation2 + $0x760] sm:$0xff]  ;;  %v267_v55 = vld [vmem:[#allocation2 + $0x788] sm:$0xff] }
  0x76   :  { %v734_v59 = vpack.c.bf16 %v262_v52, %v258_v51 }
  0x77   :  { %715 = vmatpush1.bf16.msra.mxu0 %v714_v61  ;;  %v736_v61 = vpack.c.bf16 %v271_v56, %v267_v55 }
  0x78   :  { %843 = vmatpush1.bf16.msra.mxu1 %v842_v62  ;;  %717 = vmatprep.subr.bf16.mxu0 %v716_v63  ;;  %v266_v62 = vld [vmem:[#allocation2 + $0x780] sm:$0xff] }
  0x79   :  { %845 = vmatprep.subr.bf16.mxu1 %v844_v3  ;;  %v270_v63 = vld [vmem:[#allocation2 + $0x7a0] sm:$0xff]  ;;  %v275_v3 = vld [vmem:[#allocation2 + $0x7c8] sm:$0xff] }
  0x7a   :  { %v738_v7 = vpack.c.bf16 %v270_v63, %v266_v62 }
  0x7b   :  { %719 = vmatpush1.bf16.msra.mxu0 %v718_v9  ;;  %v740_v9 = vpack.c.bf16 %v279_v4, %v275_v3 }
  0x7c   :  { %847 = vmatpush1.bf16.msra.mxu1 %v846_v10  ;;  %721 = vmatprep.subr.bf16.mxu0 %v720_v12  ;;  %v274_v10 = vld [vmem:[#allocation2 + $0x7c0] sm:$0xff] }
  0x7d   :  { %849 = vmatprep.subr.bf16.mxu1 %v848_v16  ;;  %v278_v12 = vld [vmem:[#allocation2 + $0x7e0] sm:$0xff] }
  0x7e   :  { %v742_v16 = vpack.c.bf16 %v278_v12, %v274_v10 }
  0x7f   :  { %723 = vmatpush1.bf16.msra.mxu0 %v722_v23 }
  0x80   :  { %851 = vmatpush1.bf16.msra.mxu1 %v850_v24  ;;  %725 = vmatprep.subr.bf16.mxu0 %v724_v26 }
  0x81   :  { %853 = vmatprep.subr.bf16.mxu1 %v852_v30 }
  0x83   :  { %727 = vmatpush1.bf16.msra.mxu0 %v726_v36 }
  0x84   :  { %855 = vmatpush1.bf16.msra.mxu1 %v854_v37  ;;  %729 = vmatprep.subr.bf16.mxu0 %v728_v38 }
  0x85   :  { %857 = vmatprep.subr.bf16.mxu1 %v856_v42 }
  0x87   :  { %731 = vmatpush1.bf16.msra.mxu0 %v730_v48 }
  0x88   :  { %859 = vmatpush1.bf16.msra.mxu1 %v858_v49  ;;  %733 = vmatprep.subr.bf16.mxu0 %v732_v50 }
  0x89   :  { %861 = vmatprep.subr.bf16.mxu1 %v860_v53 }
  0x8b   :  { %735 = vmatpush1.bf16.msra.mxu0 %v734_v59 }
  0x8c   :  { %863 = vmatpush1.bf16.msra.mxu1 %v862_v60  ;;  %737 = vmatprep.subr.bf16.mxu0 %v736_v61 }
  0x8d   :  { %865 = vmatprep.subr.bf16.mxu1 %v864_v1 }
  0x8f   :  { %739 = vmatpush1.bf16.msra.mxu0 %v738_v7 }
  0x90   :  { %867 = vmatpush1.bf16.msra.mxu1 %v866_v8  ;;  %741 = vmatprep.subr.bf16.mxu0 %v740_v9 }
  0x91   :  { %869 = vmatprep.subr.bf16.mxu1 %v868_v13 }
  0x93   :  { %743 = vmatpush1.bf16.msra.mxu0 %v742_v16 }
  0x94   :  { %871 = vmatpush1.bf16.msra.mxu1 %v870_v17 }
  0x96   :  { %440 = vmatmul.mubr.f32.vlgmr.msra.gmra.mrb[0].mxu0 %v952_v22 }
  0x97   :  { %582 = vmatmul.mubr.f32.vlgmr.msra.gmra.mrb[0].mxu1 %v952_v22 }
 0x169   :  { %v441_v18 = vpop.f32.mrb[0].mxu0 }
 0x16a   :  { %v583_v19 = vpop.f32.mrb[0].mxu1  ;;  %v443_v20 = vpop.f32.mrb[1].mxu0 }
 0x16b   :  { %v592_v21 = vcombine.low %v441_v18, %v443_v20  ;;  %v585_v23 = vpop.f32.mrb[1].mxu1 }
 0x16c   :  { %v593_v24 = vcombine.low %v583_v19, %v585_v23 }
 0x16d   :  { %v600_v26 = vrot.slane %v592_v21, %v936_v11 }
 0x16e   :  { %v607_v27 = vrot.slane %v593_v24, %v936_v11 }
 0x170   :  { %v608_v28 = vcombine.low %v600_v26, %v607_v27 }
 0x172   :  { %610 = vst [vmem:[%s967_s2] sm:$0xff] %v608_v28 }
 0x173   :  { %615 = vsyncpa [#allocation3], 1 }

</bundles_post_ra>
